<compile_context>
chip_gen: v5e
topology: v5e:2x2
jax: 0.10.0
libtpu: 0.0.40
codegen_flags: <defaults>
</compile_context>

<pallas_src>
import functools
import numpy as np
import jax
import jax.numpy as jnp
from jax.experimental import pallas as pl
from jax.experimental.pallas import tpu as pltpu


# ----------------------------- helpers --------------------------------------

def _layer_norm(x, gamma, beta, eps=1e-6):
    # Matches nn.LayerNorm(d_model, eps=1e-6): biased variance over last dim.
    mean = jnp.mean(x, axis=-1, keepdims=True)
    var = jnp.mean((x - mean) ** 2, axis=-1, keepdims=True)
    return (x - mean) * jax.lax.rsqrt(var + eps) * gamma + beta


def sinusoid_table(n_position, d_hid):
    pos = np.arange(n_position, dtype=np.float64)[:, None]
    hid = np.arange(d_hid, dtype=np.float64)[None, :]
    angle = pos / np.power(10000.0, 2.0 * (hid // 2) / d_hid)
    table = angle.copy()
    table[:, 0::2] = np.sin(angle[:, 0::2])
    table[:, 1::2] = np.cos(angle[:, 1::2])
    return jnp.asarray(table, dtype=jnp.float32)  # (n_position, d_hid)


# ------------------------- fused Pallas kernel -------------------------------

def fused_encoder_kernel(x0_ref, bias_ref,
                         wqkv_ref, wo_ref,
                         g1_ref, b1_ref, w1_ref, fb1_ref, w2_ref, fb2_ref,
                         g2_ref, b2_ref,
                         o_ref,
                         *, n_head, d_k, d_v, bc, seq_len):
    """grid=(n_batch_blocks, n_layers).  One grid step == one EncoderLayer
    applied to one batch block of bc sequences.

    The activation lives in the resident output VMEM block across the layer
    axis (same output block index for every l), so HBM is written only once
    per batch block.  Layer weights are stacked on a leading L axis and are
    prefetched by the pipeline while the previous layer computes.
    """
    layer = pl.program_id(1)

    # Seed the activation carry with the prepped (emb + pos -> LayerNorm) x0.
    @pl.when(layer == 0)
    def _():
        o_ref[...] = x0_ref[...]

    # Per-layer weights (leading size-1 layer dim squeezed via [0]); bf16.
    wqkv = wqkv_ref[0]          # (D, H*(2*d_k + d_v))   1/sqrt(d_k) pre-folded
    wo = wo_ref[0]              # (H*d_v, D)
    g1 = g1_ref[0]; b1 = b1_ref[0]
    w1 = w1_ref[0]; fb1 = fb1_ref[0]
    w2 = w2_ref[0]; fb2 = fb2_ref[0]
    g2 = g2_ref[0]; b2 = b2_ref[0]

    x = o_ref[...]              # (bc*S, D) f32 activation carry

    # ---- Fused lane-dense QKV projection: one MXU call, bf16 in / f32 acc.
    qkv = jnp.dot(x.astype(jnp.bfloat16), wqkv,
                  preferred_element_type=jnp.float32)     # (bc*S, H*(2dk+dv))
    hq = n_head * d_k
    q_all = qkv[:, :hq]
    k_all = qkv[:, hq:2 * hq]
    v_all = qkv[:, 2 * hq:]

    # ---- Masked attention: scores are per batch item / per head.
    # TODO(synk): at production S, tile over KV blocks (online softmax) so the
    # (S, S) score tensor never fully materializes (v7x 64 MiB VMEM budget).
    ctx_rows = []
    for i in range(bc):                                   # static, tiny block
        r = i * seq_len
        qb = q_all[r:r + seq_len]                         # (S, H*d_k)
        kb = k_all[r:r + seq_len]
        vb = v_all[r:r + seq_len]
        bias = bias_ref[i]                                # (1, S) additive mask
        heads = []
        for h in range(n_head):                           # static head slices
            qh = qb[:, h * d_k:(h + 1) * d_k].astype(jnp.bfloat16)
            kh = kb[:, h * d_k:(h + 1) * d_k].astype(jnp.bfloat16)
            vh = vb[:, h * d_v:(h + 1) * d_v].astype(jnp.bfloat16)
            s = jax.lax.dot_general(qh, kh, (((1,), (1,)), ((), ())),
                                    preferred_element_type=jnp.float32)
            s = s + bias                                  # -1e9 on padded keys
            s = s - jnp.max(s, axis=-1, keepdims=True)    # f32 softmax
            p = jnp.exp(s)
            p = p * pl.reciprocal(jnp.sum(p, axis=-1, keepdims=True),
                                  approx=True)
            heads.append(jnp.dot(p.astype(jnp.bfloat16), vh,
                                 preferred_element_type=jnp.float32))
        ctx_rows.append(jnp.concatenate(heads, axis=-1))  # (S, H*d_v)
    ctx = ctx_rows[0] if bc == 1 else jnp.concatenate(ctx_rows, axis=0)

    # ---- Output projection: concat-over-lanes @ W_O, one MXU contraction.
    attn_out = jnp.dot(ctx.astype(jnp.bfloat16), wo,
                       preferred_element_type=jnp.float32)  # (bc*S, D)
    x1 = _layer_norm(attn_out + x, g1, b1)                  # residual + post-LN

    # ---- Position-wise feed-forward (bf16 MXU inputs, f32 accumulation).
    # TODO(synk): for production d_inner, K-tile these dots with
    # pltpu.emit_pipeline so w1/w2 are not both fully resident on v7x.
    h1 = jnp.maximum(
        jnp.dot(x1.astype(jnp.bfloat16), w1,
                preferred_element_type=jnp.float32) + fb1, 0.0)
    ff = jnp.dot(h1.astype(jnp.bfloat16), w2,
                 preferred_element_type=jnp.float32) + fb2

    o_ref[...] = _layer_norm(ff + x1, g2, b2)               # carry / final out


# ------------------------- pallas_call wrapper --------------------------------

def encoder_forward(params, src_seq, src_mask, pos_table, *, n_head, d_k, d_v,
                    batch_block=1):
    B, S = src_seq.shape
    D = params["emb_table"].shape[1]
    L = params["wq"].shape[0]
    d_inner = params["w1"].shape[-1]
    bc = batch_block
    assert B % bc == 0
    n_bblk = B // bc

    # ---- mem-bound glue the kernel should not carry for every layer --------
    # TODO(synk): for large vocab/seq, feed token ids via PrefetchScalarGridSpec
    # + pl.Element row gather instead of a wrapper-side embedding gather.
    emb = jnp.take(params["emb_table"], src_seq, axis=0)          # (B, S, D)
    x0 = _layer_norm(emb + pos_table[:S][None],
                     params["enc_ln_g"], params["enc_ln_b"])      # dropout=id
    x0 = x0.reshape(B * S, D).astype(jnp.float32)

    # Additive key-padding mask, computed once (kernel just adds it).
    bias = jnp.where(src_mask == 0, jnp.float32(-1e9), jnp.float32(0.0))  # (B,1,S)

    # ---- repack attention weights lane-dense + bf16, fold in 1/sqrt(d_k) ----
    scale = jnp.float32(1.0 / np.sqrt(d_k))

    def lane_fuse(w):   # (L, H, D, dh) -> (L, D, H*dh), head blocks along lanes
        return jnp.transpose(w, (0, 2, 1, 3)).reshape(L, D, -1)

    wqkv = jnp.concatenate([lane_fuse(params["wq"] * scale),
                            lane_fuse(params["wk"]),
                            lane_fuse(params["wv"])],
                           axis=-1).astype(jnp.bfloat16)   # (L, D, H*(2dk+dv))
    wo = params["wo"].reshape(L, n_head * d_v, D).astype(jnp.bfloat16)
    w1 = params["w1"].astype(jnp.bfloat16)
    w2 = params["w2"].astype(jnp.bfloat16)
    qkv_cols = n_head * (2 * d_k + d_v)

    # Note: last dim D<128 at toy size -> masked stores; irrelevant once
    # d_model >= 128 (production).
    x_spec = pl.BlockSpec((bc * S, D), lambda bb, l: (bb, 0))
    bias_spec = pl.BlockSpec((bc, 1, S), lambda bb, l: (bb, 0, 0))

    def per_layer(tail_shape):
        nz = len(tail_shape)
        return pl.BlockSpec((1,) + tuple(tail_shape),
                            lambda bb, l, nz=nz: (l,) + (0,) * nz)

    kern = functools.partial(fused_encoder_kernel, n_head=n_head, d_k=d_k,
                             d_v=d_v, bc=bc, seq_len=S)

    out = pl.pallas_call(
        kern,
        out_shape=jax.ShapeDtypeStruct((B * S, D), jnp.float32),
        grid=(n_bblk, L),
        in_specs=[
            x_spec,                                           # prepped x0
            bias_spec,                                        # additive key-pad mask
            per_layer((D, qkv_cols)),                         # fused QKV weights (bf16)
            per_layer((n_head * d_v, D)),                     # output projection (bf16)
            per_layer((1, D)), per_layer((1, D)),             # attn LN gamma/beta
            per_layer((D, d_inner)), per_layer((1, d_inner)), # FFN w1/b1
            per_layer((d_inner, D)), per_layer((1, D)),       # FFN w2/b2
            per_layer((1, D)), per_layer((1, D)),             # ffn LN gamma/beta
        ],
        out_specs=x_spec,                                     # resident across L
        compiler_params=pltpu.CompilerParams(
            # batch blocks shard across TensorCores (v7x megacore);
            # layers are a sequential carry.
            dimension_semantics=("parallel", "arbitrary"),
            # Raise scoped VMEM above the per-chip default; re-derive from
            # buffer math when scaling d_model / d_inner / S up.
            vmem_limit_bytes=32 * 1024 * 1024),
    )(x0, bias, wqkv, wo,
      params["ln1_g"], params["ln1_b"],
      w1, params["b1"], w2, params["b2"],
      params["ln2_g"], params["ln2_b"])
    return (out.reshape(B, S, D),)


# ------------------------- pure-JAX reference --------------------------------

def encoder_reference(params, src_seq, src_mask, pos_table, *, n_head, d_k, d_v):
    """Reference with the kernel's precision policy: bf16 MXU inputs,
    f32 accumulation, f32 LayerNorm / softmax."""
    bf = jnp.bfloat16
    S = src_seq.shape[1]
    emb = jnp.take(params["emb_table"], src_seq, axis=0)
    x = _layer_norm(emb + pos_table[:S][None],
                    params["enc_ln_g"], params["enc_ln_b"])
    L = params["wq"].shape[0]
    for l in range(L):
        wq, wk, wv, wo = (params["wq"][l].astype(bf), params["wk"][l].astype(bf),
                          params["wv"][l].astype(bf), params["wo"][l].astype(bf))
        xb = x.astype(bf)
        q = jnp.einsum('bsd,hdk->bhsk', xb, wq, preferred_element_type=jnp.float32)
        k = jnp.einsum('bsd,hdk->bhsk', xb, wk, preferred_element_type=jnp.float32)
        v = jnp.einsum('bsd,hdv->bhsv', xb, wv, preferred_element_type=jnp.float32)
        s = jnp.einsum('bhsk,bhtk->bhst', q.astype(bf), k.astype(bf),
                       preferred_element_type=jnp.float32) / (d_k ** 0.5)
        s = jnp.where(src_mask[:, None, :, :] == 0, -1e9, s)
        p = jax.nn.softmax(s, axis=-1)
        ctx = jnp.einsum('bhst,bhtv->bhsv', p.astype(bf), v.astype(bf),
                         preferred_element_type=jnp.float32)
        attn = jnp.einsum('bhsv,hvd->bsd', ctx.astype(bf), wo,
                          preferred_element_type=jnp.float32)
        x1 = _layer_norm(attn + x, params["ln1_g"][l], params["ln1_b"][l])
        h1 = jax.nn.relu(
            jnp.einsum('bsd,de->bse', x1.astype(bf), params["w1"][l].astype(bf),
                       preferred_element_type=jnp.float32) + params["b1"][l])
        ff = jnp.einsum('bse,ed->bsd', h1.astype(bf), params["w2"][l].astype(bf),
                        preferred_element_type=jnp.float32) + params["b2"][l]
        x = _layer_norm(ff + x1, params["ln2_g"][l], params["ln2_b"][l])
    return x


# ------------------------- parameter construction ----------------------------

def init_params(key, *, n_src_vocab, d_word_vec, n_layers, n_head, d_k, d_v,
                d_model, d_inner, pad_idx):
    ks = jax.random.split(key, 8)
    emb = 0.02 * jax.random.normal(ks[0], (n_src_vocab, d_word_vec), jnp.float32)
    emb = emb.at[pad_idx].set(0.0)                        # padding_idx row is zero
    L = n_layers
    return {
        "emb_table": emb,
        "enc_ln_g": jnp.ones((1, d_model), jnp.float32),
        "enc_ln_b": jnp.zeros((1, d_model), jnp.float32),
        # Attention projections stored per-head:
        # q[h] = x @ wq[h]; out = sum_h ctx[h] @ wo[h]  (== concat @ W_O).
        "wq": 0.05 * jax.random.normal(ks[1], (L, n_head, d_model, d_k), jnp.float32),
        "wk": 0.05 * jax.random.normal(ks[2], (L, n_head, d_model, d_k), jnp.float32),
        "wv": 0.05 * jax.random.normal(ks[3], (L, n_head, d_model, d_v), jnp.float32),
        "wo": 0.05 * jax.random.normal(ks[4], (L, n_head, d_v, d_model), jnp.float32),
        "ln1_g": jnp.ones((L, 1, d_model), jnp.float32),
        "ln1_b": jnp.zeros((L, 1, d_model), jnp.float32),
        "w1": 0.05 * jax.random.normal(ks[5], (L, d_model, d_inner), jnp.float32),
        "b1": 0.01 * jax.random.normal(ks[6], (L, 1, d_inner), jnp.float32),
        "w2": 0.05 * jax.random.normal(ks[7], (L, d_inner, d_model), jnp.float32),
        "b2": jnp.zeros((L, 1, d_model), jnp.float32),
        "ln2_g": jnp.ones((L, 1, d_model), jnp.float32),
        "ln2_b": jnp.zeros((L, 1, d_model), jnp.float32),
    }


# -------------------------------- main ---------------------------------------

if __name__ == "__main__":
    # Small config consistent with Encoder.__init__
    n_src_vocab, d_word_vec, d_model = 16, 32, 32
    n_layers, n_head, d_k, d_v, d_inner = 2, 4, 8, 8, 64
    pad_idx, n_position = 0, 200
    B, S = 2, 8

    key = jax.random.PRNGKey(0)
    pkey, skey = jax.random.split(key)
    params = init_params(pkey, n_src_vocab=n_src_vocab, d_word_vec=d_word_vec,
                         n_layers=n_layers, n_head=n_head, d_k=d_k, d_v=d_v,
                         d_model=d_model, d_inner=d_inner, pad_idx=pad_idx)
    pos_table = sinusoid_table(n_position, d_word_vec)

    src_seq = jax.random.randint(skey, (B, S), 1, n_src_vocab, dtype=jnp.int32)
    src_seq = src_seq.at[1, -2:].set(pad_idx)                      # some padding
    src_mask = (src_seq != pad_idx).astype(jnp.int32)[:, None, :]  # (B, 1, S)

    (enc_out,) = encoder_forward(params, src_seq, src_mask, pos_table,
                                 n_head=n_head, d_k=d_k, d_v=d_v, batch_block=1)
    enc_out = jax.block_until_ready(enc_out)

    assert enc_out.shape == (B, S, d_model)
    assert bool(jnp.all(jnp.isfinite(enc_out)))

    ref = encoder_reference(params, src_seq, src_mask, pos_table,
                            n_head=n_head, d_k=d_k, d_v=d_v)
    # Reference matches the kernel's bf16-input / f32-acc policy; tolerance
    # covers pl.reciprocal(approx=True) and scale-folding rounding.
    max_err = float(jnp.max(jnp.abs(enc_out - ref)))
    assert max_err < 2e-2, f"mismatch vs reference: max abs err {max_err}"

    print("KERNEL_OK")
</pallas_src>

<mosaic_0001>
module attributes {stable_mosaic.version = 11 : i64} {
  func.func @fused_encoder_kernel(%arg0: i32, %arg1: i32, %arg2: memref<8x32xf32, #tpu.memory_space<vmem>>, %arg3: memref<1x1x8xf32, #tpu.memory_space<vmem>>, %arg4: memref<1x32x96xbf16, #tpu.memory_space<vmem>>, %arg5: memref<1x32x32xbf16, #tpu.memory_space<vmem>>, %arg6: memref<1x1x32xf32, #tpu.memory_space<vmem>>, %arg7: memref<1x1x32xf32, #tpu.memory_space<vmem>>, %arg8: memref<1x32x64xbf16, #tpu.memory_space<vmem>>, %arg9: memref<1x1x64xf32, #tpu.memory_space<vmem>>, %arg10: memref<1x64x32xbf16, #tpu.memory_space<vmem>>, %arg11: memref<1x1x32xf32, #tpu.memory_space<vmem>>, %arg12: memref<1x1x32xf32, #tpu.memory_space<vmem>>, %arg13: memref<1x1x32xf32, #tpu.memory_space<vmem>>, %arg14: memref<8x32xf32, #tpu.memory_space<vmem>>) attributes {dimension_semantics = [#tpu.dimension_semantics<parallel>, #tpu.dimension_semantics<arbitrary>], iteration_bounds = array<i64: 2, 2>, scalar_prefetch = 0 : i64, scratch_operands = 0 : i64, tpu.core_type = #tpu.core_type<tc>, window_params = [{transform_indices = @transform_0, window_bounds = array<i64: 8, 32>}, {transform_indices = @transform_1, window_bounds = array<i64: 1, 1, 8>}, {transform_indices = @transform_2, window_bounds = array<i64: 1, 32, 96>}, {transform_indices = @transform_3, window_bounds = array<i64: 1, 32, 32>}, {transform_indices = @transform_4, window_bounds = array<i64: 1, 1, 32>}, {transform_indices = @transform_5, window_bounds = array<i64: 1, 1, 32>}, {transform_indices = @transform_6, window_bounds = array<i64: 1, 32, 64>}, {transform_indices = @transform_7, window_bounds = array<i64: 1, 1, 64>}, {transform_indices = @transform_8, window_bounds = array<i64: 1, 64, 32>}, {transform_indices = @transform_9, window_bounds = array<i64: 1, 1, 32>}, {transform_indices = @transform_10, window_bounds = array<i64: 1, 1, 32>}, {transform_indices = @transform_11, window_bounds = array<i64: 1, 1, 32>}, {transform_indices = @transform_12, window_bounds = array<i64: 8, 32>}]} {
    %c0_i32 = arith.constant 0 : i32
    %0 = arith.cmpi eq, %arg1, %c0_i32 : i32
    %1 = arith.extui %0 : i1 to i32
    %c0_i32_0 = arith.constant 0 : i32
    %2 = arith.cmpi ne, %1, %c0_i32_0 : i32
    scf.if %2 {
      %c0_67 = arith.constant 0 : index
      %c0_68 = arith.constant 0 : index
      %175 = vector.load %arg2[%c0_67, %c0_68] : memref<8x32xf32, #tpu.memory_space<vmem>>, vector<8x32xf32>
      %c0_69 = arith.constant 0 : index
      %c0_70 = arith.constant 0 : index
      %176 = vector.load %arg14[%c0_69, %c0_70] : memref<8x32xf32, #tpu.memory_space<vmem>>, vector<8x32xf32>
      tpu.vector_store %arg14[%c0_69, %c0_70], %175 {strides = array<i32>} : memref<8x32xf32, #tpu.memory_space<vmem>>, vector<8x32xf32>,
    } else {
    }
    %c0 = arith.constant 0 : index
    %c0_1 = arith.constant 0 : index
    %c0_2 = arith.constant 0 : index
    %3 = vector.load %arg4[%c0, %c0_1, %c0_2] : memref<1x32x96xbf16, #tpu.memory_space<vmem>>, vector<1x32x96xbf16>
    %4 = vector.shape_cast %3 : vector<1x32x96xbf16> to vector<32x96xbf16>
    %c0_3 = arith.constant 0 : index
    %c0_4 = arith.constant 0 : index
    %c0_5 = arith.constant 0 : index
    %5 = vector.load %arg5[%c0_3, %c0_4, %c0_5] : memref<1x32x32xbf16, #tpu.memory_space<vmem>>, vector<1x32x32xbf16>
    %6 = vector.shape_cast %5 : vector<1x32x32xbf16> to vector<32x32xbf16>
    %c0_6 = arith.constant 0 : index
    %c0_7 = arith.constant 0 : index
    %c0_8 = arith.constant 0 : index
    %7 = vector.load %arg6[%c0_6, %c0_7, %c0_8] : memref<1x1x32xf32, #tpu.memory_space<vmem>>, vector<1x1x32xf32>
    %8 = vector.shape_cast %7 : vector<1x1x32xf32> to vector<1x32xf32>
    %c0_9 = arith.constant 0 : index
    %c0_10 = arith.constant 0 : index
    %c0_11 = arith.constant 0 : index
    %9 = vector.load %arg7[%c0_9, %c0_10, %c0_11] : memref<1x1x32xf32, #tpu.memory_space<vmem>>, vector<1x1x32xf32>
    %10 = vector.shape_cast %9 : vector<1x1x32xf32> to vector<1x32xf32>
    %c0_12 = arith.constant 0 : index
    %c0_13 = arith.constant 0 : index
    %c0_14 = arith.constant 0 : index
    %11 = vector.load %arg8[%c0_12, %c0_13, %c0_14] : memref<1x32x64xbf16, #tpu.memory_space<vmem>>, vector<1x32x64xbf16>
    %12 = vector.shape_cast %11 : vector<1x32x64xbf16> to vector<32x64xbf16>
    %c0_15 = arith.constant 0 : index
    %c0_16 = arith.constant 0 : index
    %c0_17 = arith.constant 0 : index
    %13 = vector.load %arg9[%c0_15, %c0_16, %c0_17] : memref<1x1x64xf32, #tpu.memory_space<vmem>>, vector<1x1x64xf32>
    %14 = vector.shape_cast %13 : vector<1x1x64xf32> to vector<1x64xf32>
    %c0_18 = arith.constant 0 : index
    %c0_19 = arith.constant 0 : index
    %c0_20 = arith.constant 0 : index
    %15 = vector.load %arg10[%c0_18, %c0_19, %c0_20] : memref<1x64x32xbf16, #tpu.memory_space<vmem>>, vector<1x64x32xbf16>
    %16 = vector.shape_cast %15 : vector<1x64x32xbf16> to vector<64x32xbf16>
    %c0_21 = arith.constant 0 : index
    %c0_22 = arith.constant 0 : index
    %c0_23 = arith.constant 0 : index
    %17 = vector.load %arg11[%c0_21, %c0_22, %c0_23] : memref<1x1x32xf32, #tpu.memory_space<vmem>>, vector<1x1x32xf32>
    %18 = vector.shape_cast %17 : vector<1x1x32xf32> to vector<1x32xf32>
    %c0_24 = arith.constant 0 : index
    %c0_25 = arith.constant 0 : index
    %c0_26 = arith.constant 0 : index
    %19 = vector.load %arg12[%c0_24, %c0_25, %c0_26] : memref<1x1x32xf32, #tpu.memory_space<vmem>>, vector<1x1x32xf32>
    %20 = vector.shape_cast %19 : vector<1x1x32xf32> to vector<1x32xf32>
    %c0_27 = arith.constant 0 : index
    %c0_28 = arith.constant 0 : index
    %c0_29 = arith.constant 0 : index
    %21 = vector.load %arg13[%c0_27, %c0_28, %c0_29] : memref<1x1x32xf32, #tpu.memory_space<vmem>>, vector<1x1x32xf32>
    %22 = vector.shape_cast %21 : vector<1x1x32xf32> to vector<1x32xf32>
    %c0_30 = arith.constant 0 : index
    %c0_31 = arith.constant 0 : index
    %23 = vector.load %arg14[%c0_30, %c0_31] : memref<8x32xf32, #tpu.memory_space<vmem>>, vector<8x32xf32>
    %24 = arith.truncf %23 : vector<8x32xf32> to vector<8x32xbf16>
    %cst = arith.constant dense<0.000000e+00> : vector<8x96xf32>
    %25 = tpu.matmul %24, %4, %cst {dimension_numbers = #tpu.dot_dimension_numbers<[1], [0], [0], [1], [0, 0, 1, 1], [], []>} : vector<8x32xbf16>, vector<32x96xbf16>, vector<8x96xf32> -> vector<8x96xf32>
    %26 = vector.extract_strided_slice %25 {offsets = [0, 0], sizes = [8, 32], strides = [1, 1]} : vector<8x96xf32> to vector<8x32xf32>
    %27 = vector.extract_strided_slice %25 {offsets = [0, 32], sizes = [8, 32], strides = [1, 1]} : vector<8x96xf32> to vector<8x32xf32>
    %28 = vector.extract_strided_slice %25 {offsets = [0, 64], sizes = [8, 32], strides = [1, 1]} : vector<8x96xf32> to vector<8x32xf32>
    %c0_32 = arith.constant 0 : index
    %c0_33 = arith.constant 0 : index
    %c0_34 = arith.constant 0 : index
    %29 = vector.load %arg3[%c0_32, %c0_33, %c0_34] : memref<1x1x8xf32, #tpu.memory_space<vmem>>, vector<1x1x8xf32>
    %30 = vector.shape_cast %29 : vector<1x1x8xf32> to vector<1x8xf32>
    %31 = vector.extract_strided_slice %26 {offsets = [0, 0], sizes = [8, 8], strides = [1, 1]} : vector<8x32xf32> to vector<8x8xf32>
    %32 = arith.truncf %31 : vector<8x8xf32> to vector<8x8xbf16>
    %33 = vector.extract_strided_slice %27 {offsets = [0, 0], sizes = [8, 8], strides = [1, 1]} : vector<8x32xf32> to vector<8x8xf32>
    %34 = arith.truncf %33 : vector<8x8xf32> to vector<8x8xbf16>
    %35 = vector.extract_strided_slice %28 {offsets = [0, 0], sizes = [8, 8], strides = [1, 1]} : vector<8x32xf32> to vector<8x8xf32>
    %36 = arith.truncf %35 : vector<8x8xf32> to vector<8x8xbf16>
    %cst_35 = arith.constant dense<0.000000e+00> : vector<8x8xf32>
    %37 = tpu.matmul %32, %34, %cst_35 {dimension_numbers = #tpu.dot_dimension_numbers<[1], [1], [0], [0], [0, 0, 1, 0], [], []>} : vector<8x8xbf16>, vector<8x8xbf16>, vector<8x8xf32> -> vector<8x8xf32>
    %38 = vector.broadcast %30 : vector<1x8xf32> to vector<8x8xf32>
    %39 = arith.addf %37, %38 : vector<8x8xf32>
    %cst_36 = arith.constant dense<0xFF800000> : vector<8xf32>
    %40 = vector.multi_reduction <maximumf>, %39, %cst_36 [1] : vector<8x8xf32> to vector<8xf32>
    %41 = vector.shape_cast %40 : vector<8xf32> to vector<8x1xf32>
    %42 = vector.broadcast %41 : vector<8x1xf32> to vector<8x8xf32>
    %43 = arith.subf %39, %42 : vector<8x8xf32>
    %44 = math.exp %43 : vector<8x8xf32>
    %cst_37 = arith.constant dense<0.000000e+00> : vector<8xf32>
    %45 = vector.multi_reduction <add>, %44, %cst_37 [1] : vector<8x8xf32> to vector<8xf32>
    %46 = vector.shape_cast %45 : vector<8xf32> to vector<8x1xf32>
    %47 = tpu.reciprocal %46 {approx = true} : vector<8x1xf32> -> vector<8x1xf32>
    %48 = vector.broadcast %47 : vector<8x1xf32> to vector<8x8xf32>
    %49 = arith.mulf %44, %48 : vector<8x8xf32>
    %50 = arith.truncf %49 : vector<8x8xf32> to vector<8x8xbf16>
    %cst_38 = arith.constant dense<0.000000e+00> : vector<8x8xf32>
    %51 = tpu.matmul %50, %36, %cst_38 {dimension_numbers = #tpu.dot_dimension_numbers<[1], [0], [0], [1], [0, 0, 1, 1], [], []>} : vector<8x8xbf16>, vector<8x8xbf16>, vector<8x8xf32> -> vector<8x8xf32>
    %52 = vector.extract_strided_slice %26 {offsets = [0, 8], sizes = [8, 8], strides = [1, 1]} : vector<8x32xf32> to vector<8x8xf32>
    %53 = arith.truncf %52 : vector<8x8xf32> to vector<8x8xbf16>
    %54 = vector.extract_strided_slice %27 {offsets = [0, 8], sizes = [8, 8], strides = [1, 1]} : vector<8x32xf32> to vector<8x8xf32>
    %55 = arith.truncf %54 : vector<8x8xf32> to vector<8x8xbf16>
    %56 = vector.extract_strided_slice %28 {offsets = [0, 8], sizes = [8, 8], strides = [1, 1]} : vector<8x32xf32> to vector<8x8xf32>
    %57 = arith.truncf %56 : vector<8x8xf32> to vector<8x8xbf16>
    %cst_39 = arith.constant dense<0.000000e+00> : vector<8x8xf32>
    %58 = tpu.matmul %53, %55, %cst_39 {dimension_numbers = #tpu.dot_dimension_numbers<[1], [1], [0], [0], [0, 0, 1, 0], [], []>} : vector<8x8xbf16>, vector<8x8xbf16>, vector<8x8xf32> -> vector<8x8xf32>
    %59 = vector.broadcast %30 : vector<1x8xf32> to vector<8x8xf32>
    %60 = arith.addf %58, %59 : vector<8x8xf32>
    %cst_40 = arith.constant dense<0xFF800000> : vector<8xf32>
    %61 = vector.multi_reduction <maximumf>, %60, %cst_40 [1] : vector<8x8xf32> to vector<8xf32>
    %62 = vector.shape_cast %61 : vector<8xf32> to vector<8x1xf32>
    %63 = vector.broadcast %62 : vector<8x1xf32> to vector<8x8xf32>
    %64 = arith.subf %60, %63 : vector<8x8xf32>
    %65 = math.exp %64 : vector<8x8xf32>
    %cst_41 = arith.constant dense<0.000000e+00> : vector<8xf32>
    %66 = vector.multi_reduction <add>, %65, %cst_41 [1] : vector<8x8xf32> to vector<8xf32>
    %67 = vector.shape_cast %66 : vector<8xf32> to vector<8x1xf32>
    %68 = tpu.reciprocal %67 {approx = true} : vector<8x1xf32> -> vector<8x1xf32>
    %69 = vector.broadcast %68 : vector<8x1xf32> to vector<8x8xf32>
    %70 = arith.mulf %65, %69 : vector<8x8xf32>
    %71 = arith.truncf %70 : vector<8x8xf32> to vector<8x8xbf16>
    %cst_42 = arith.constant dense<0.000000e+00> : vector<8x8xf32>
    %72 = tpu.matmul %71, %57, %cst_42 {dimension_numbers = #tpu.dot_dimension_numbers<[1], [0], [0], [1], [0, 0, 1, 1], [], []>} : vector<8x8xbf16>, vector<8x8xbf16>, vector<8x8xf32> -> vector<8x8xf32>
    %73 = vector.extract_strided_slice %26 {offsets = [0, 16], sizes = [8, 8], strides = [1, 1]} : vector<8x32xf32> to vector<8x8xf32>
    %74 = arith.truncf %73 : vector<8x8xf32> to vector<8x8xbf16>
    %75 = vector.extract_strided_slice %27 {offsets = [0, 16], sizes = [8, 8], strides = [1, 1]} : vector<8x32xf32> to vector<8x8xf32>
    %76 = arith.truncf %75 : vector<8x8xf32> to vector<8x8xbf16>
    %77 = vector.extract_strided_slice %28 {offsets = [0, 16], sizes = [8, 8], strides = [1, 1]} : vector<8x32xf32> to vector<8x8xf32>
    %78 = arith.truncf %77 : vector<8x8xf32> to vector<8x8xbf16>
    %cst_43 = arith.constant dense<0.000000e+00> : vector<8x8xf32>
    %79 = tpu.matmul %74, %76, %cst_43 {dimension_numbers = #tpu.dot_dimension_numbers<[1], [1], [0], [0], [0, 0, 1, 0], [], []>} : vector<8x8xbf16>, vector<8x8xbf16>, vector<8x8xf32> -> vector<8x8xf32>
    %80 = vector.broadcast %30 : vector<1x8xf32> to vector<8x8xf32>
    %81 = arith.addf %79, %80 : vector<8x8xf32>
    %cst_44 = arith.constant dense<0xFF800000> : vector<8xf32>
    %82 = vector.multi_reduction <maximumf>, %81, %cst_44 [1] : vector<8x8xf32> to vector<8xf32>
    %83 = vector.shape_cast %82 : vector<8xf32> to vector<8x1xf32>
    %84 = vector.broadcast %83 : vector<8x1xf32> to vector<8x8xf32>
    %85 = arith.subf %81, %84 : vector<8x8xf32>
    %86 = math.exp %85 : vector<8x8xf32>
    %cst_45 = arith.constant dense<0.000000e+00> : vector<8xf32>
    %87 = vector.multi_reduction <add>, %86, %cst_45 [1] : vector<8x8xf32> to vector<8xf32>
    %88 = vector.shape_cast %87 : vector<8xf32> to vector<8x1xf32>
    %89 = tpu.reciprocal %88 {approx = true} : vector<8x1xf32> -> vector<8x1xf32>
    %90 = vector.broadcast %89 : vector<8x1xf32> to vector<8x8xf32>
    %91 = arith.mulf %86, %90 : vector<8x8xf32>
    %92 = arith.truncf %91 : vector<8x8xf32> to vector<8x8xbf16>
    %cst_46 = arith.constant dense<0.000000e+00> : vector<8x8xf32>
    %93 = tpu.matmul %92, %78, %cst_46 {dimension_numbers = #tpu.dot_dimension_numbers<[1], [0], [0], [1], [0, 0, 1, 1], [], []>} : vector<8x8xbf16>, vector<8x8xbf16>, vector<8x8xf32> -> vector<8x8xf32>
    %94 = vector.extract_strided_slice %26 {offsets = [0, 24], sizes = [8, 8], strides = [1, 1]} : vector<8x32xf32> to vector<8x8xf32>
    %95 = arith.truncf %94 : vector<8x8xf32> to vector<8x8xbf16>
    %96 = vector.extract_strided_slice %27 {offsets = [0, 24], sizes = [8, 8], strides = [1, 1]} : vector<8x32xf32> to vector<8x8xf32>
    %97 = arith.truncf %96 : vector<8x8xf32> to vector<8x8xbf16>
    %98 = vector.extract_strided_slice %28 {offsets = [0, 24], sizes = [8, 8], strides = [1, 1]} : vector<8x32xf32> to vector<8x8xf32>
    %99 = arith.truncf %98 : vector<8x8xf32> to vector<8x8xbf16>
    %cst_47 = arith.constant dense<0.000000e+00> : vector<8x8xf32>
    %100 = tpu.matmul %95, %97, %cst_47 {dimension_numbers = #tpu.dot_dimension_numbers<[1], [1], [0], [0], [0, 0, 1, 0], [], []>} : vector<8x8xbf16>, vector<8x8xbf16>, vector<8x8xf32> -> vector<8x8xf32>
    %101 = vector.broadcast %30 : vector<1x8xf32> to vector<8x8xf32>
    %102 = arith.addf %100, %101 : vector<8x8xf32>
    %cst_48 = arith.constant dense<0xFF800000> : vector<8xf32>
    %103 = vector.multi_reduction <maximumf>, %102, %cst_48 [1] : vector<8x8xf32> to vector<8xf32>
    %104 = vector.shape_cast %103 : vector<8xf32> to vector<8x1xf32>
    %105 = vector.broadcast %104 : vector<8x1xf32> to vector<8x8xf32>
    %106 = arith.subf %102, %105 : vector<8x8xf32>
    %107 = math.exp %106 : vector<8x8xf32>
    %cst_49 = arith.constant dense<0.000000e+00> : vector<8xf32>
    %108 = vector.multi_reduction <add>, %107, %cst_49 [1] : vector<8x8xf32> to vector<8xf32>
    %109 = vector.shape_cast %108 : vector<8xf32> to vector<8x1xf32>
    %110 = tpu.reciprocal %109 {approx = true} : vector<8x1xf32> -> vector<8x1xf32>
    %111 = vector.broadcast %110 : vector<8x1xf32> to vector<8x8xf32>
    %112 = arith.mulf %107, %111 : vector<8x8xf32>
    %113 = arith.truncf %112 : vector<8x8xf32> to vector<8x8xbf16>
    %cst_50 = arith.constant dense<0.000000e+00> : vector<8x8xf32>
    %114 = tpu.matmul %113, %99, %cst_50 {dimension_numbers = #tpu.dot_dimension_numbers<[1], [0], [0], [1], [0, 0, 1, 1], [], []>} : vector<8x8xbf16>, vector<8x8xbf16>, vector<8x8xf32> -> vector<8x8xf32>
    %115 = tpu.concatenate %51, %72, %93, %114 in 1 : vector<8x8xf32>, vector<8x8xf32>, vector<8x8xf32>, vector<8x8xf32> -> vector<8x32xf32>
    %116 = arith.truncf %115 : vector<8x32xf32> to vector<8x32xbf16>
    %cst_51 = arith.constant dense<0.000000e+00> : vector<8x32xf32>
    %117 = tpu.matmul %116, %6, %cst_51 {dimension_numbers = #tpu.dot_dimension_numbers<[1], [0], [0], [1], [0, 0, 1, 1], [], []>} : vector<8x32xbf16>, vector<32x32xbf16>, vector<8x32xf32> -> vector<8x32xf32>
    %118 = arith.addf %117, %23 : vector<8x32xf32>
    %cst_52 = arith.constant dense<0.000000e+00> : vector<8xf32>
    %119 = vector.multi_reduction <add>, %118, %cst_52 [1] : vector<8x32xf32> to vector<8xf32>
    %120 = vector.shape_cast %119 : vector<8xf32> to vector<8x1xf32>
    %cst_53 = arith.constant 3.200000e+01 : f32
    %121 = vector.broadcast %cst_53 : f32 to vector<8x1xf32>
    %122 = arith.divf %120, %121 : vector<8x1xf32>
    %123 = vector.broadcast %122 : vector<8x1xf32> to vector<8x32xf32>
    %124 = arith.subf %118, %123 : vector<8x32xf32>
    %125 = arith.mulf %124, %124 : vector<8x32xf32>
    %cst_54 = arith.constant dense<0.000000e+00> : vector<8xf32>
    %126 = vector.multi_reduction <add>, %125, %cst_54 [1] : vector<8x32xf32> to vector<8xf32>
    %127 = vector.shape_cast %126 : vector<8xf32> to vector<8x1xf32>
    %cst_55 = arith.constant 3.200000e+01 : f32
    %128 = vector.broadcast %cst_55 : f32 to vector<8x1xf32>
    %129 = arith.divf %127, %128 : vector<8x1xf32>
    %130 = vector.broadcast %122 : vector<8x1xf32> to vector<8x32xf32>
    %131 = arith.subf %118, %130 : vector<8x32xf32>
    %cst_56 = arith.constant 9.99999997E-7 : f32
    %132 = vector.broadcast %cst_56 : f32 to vector<8x1xf32>
    %133 = arith.addf %129, %132 : vector<8x1xf32>
    %134 = math.rsqrt %133 : vector<8x1xf32>
    %135 = vector.broadcast %134 : vector<8x1xf32> to vector<8x32xf32>
    %136 = arith.mulf %131, %135 : vector<8x32xf32>
    %137 = vector.broadcast %8 : vector<1x32xf32> to vector<8x32xf32>
    %138 = arith.mulf %136, %137 : vector<8x32xf32>
    %139 = vector.broadcast %10 : vector<1x32xf32> to vector<8x32xf32>
    %140 = arith.addf %138, %139 : vector<8x32xf32>
    %141 = arith.truncf %140 : vector<8x32xf32> to vector<8x32xbf16>
    %cst_57 = arith.constant dense<0.000000e+00> : vector<8x64xf32>
    %142 = tpu.matmul %141, %12, %cst_57 {dimension_numbers = #tpu.dot_dimension_numbers<[1], [0], [0], [1], [0, 0, 1, 1], [], []>} : vector<8x32xbf16>, vector<32x64xbf16>, vector<8x64xf32> -> vector<8x64xf32>
    %143 = vector.broadcast %14 : vector<1x64xf32> to vector<8x64xf32>
    %144 = arith.addf %142, %143 : vector<8x64xf32>
    %cst_58 = arith.constant 0.000000e+00 : f32
    %145 = vector.broadcast %cst_58 : f32 to vector<8x64xf32>
    %146 = arith.maximumf %144, %145 : vector<8x64xf32>
    %147 = arith.truncf %146 : vector<8x64xf32> to vector<8x64xbf16>
    %cst_59 = arith.constant dense<0.000000e+00> : vector<8x32xf32>
    %148 = tpu.matmul %147, %16, %cst_59 {dimension_numbers = #tpu.dot_dimension_numbers<[1], [0], [0], [1], [0, 0, 1, 1], [], []>} : vector<8x64xbf16>, vector<64x32xbf16>, vector<8x32xf32> -> vector<8x32xf32>
    %149 = vector.broadcast %18 : vector<1x32xf32> to vector<8x32xf32>
    %150 = arith.addf %148, %149 : vector<8x32xf32>
    %151 = arith.addf %150, %140 : vector<8x32xf32>
    %cst_60 = arith.constant dense<0.000000e+00> : vector<8xf32>
    %152 = vector.multi_reduction <add>, %151, %cst_60 [1] : vector<8x32xf32> to vector<8xf32>
    %153 = vector.shape_cast %152 : vector<8xf32> to vector<8x1xf32>
    %cst_61 = arith.constant 3.200000e+01 : f32
    %154 = vector.broadcast %cst_61 : f32 to vector<8x1xf32>
    %155 = arith.divf %153, %154 : vector<8x1xf32>
    %156 = vector.broadcast %155 : vector<8x1xf32> to vector<8x32xf32>
    %157 = arith.subf %151, %156 : vector<8x32xf32>
    %158 = arith.mulf %157, %157 : vector<8x32xf32>
    %cst_62 = arith.constant dense<0.000000e+00> : vector<8xf32>
    %159 = vector.multi_reduction <add>, %158, %cst_62 [1] : vector<8x32xf32> to vector<8xf32>
    %160 = vector.shape_cast %159 : vector<8xf32> to vector<8x1xf32>
    %cst_63 = arith.constant 3.200000e+01 : f32
    %161 = vector.broadcast %cst_63 : f32 to vector<8x1xf32>
    %162 = arith.divf %160, %161 : vector<8x1xf32>
    %163 = vector.broadcast %155 : vector<8x1xf32> to vector<8x32xf32>
    %164 = arith.subf %151, %163 : vector<8x32xf32>
    %cst_64 = arith.constant 9.99999997E-7 : f32
    %165 = vector.broadcast %cst_64 : f32 to vector<8x1xf32>
    %166 = arith.addf %162, %165 : vector<8x1xf32>
    %167 = math.rsqrt %166 : vector<8x1xf32>
    %168 = vector.broadcast %167 : vector<8x1xf32> to vector<8x32xf32>
    %169 = arith.mulf %164, %168 : vector<8x32xf32>
    %170 = vector.broadcast %20 : vector<1x32xf32> to vector<8x32xf32>
    %171 = arith.mulf %169, %170 : vector<8x32xf32>
    %172 = vector.broadcast %22 : vector<1x32xf32> to vector<8x32xf32>
    %173 = arith.addf %171, %172 : vector<8x32xf32>
    %c0_65 = arith.constant 0 : index
    %c0_66 = arith.constant 0 : index
    %174 = vector.load %arg14[%c0_65, %c0_66] : memref<8x32xf32, #tpu.memory_space<vmem>>, vector<8x32xf32>
    tpu.vector_store %arg14[%c0_65, %c0_66], %173 {strides = array<i32>} : memref<8x32xf32, #tpu.memory_space<vmem>>, vector<8x32xf32>,
    return
  }
  func.func @transform_0(%arg0: i32, %arg1: i32) -> (i32, i32) {
    %c0_i32 = arith.constant 0 : i32
    %c0_i32_0 = arith.constant 0 : i32
    return %arg0, %c0_i32 : i32, i32
  }
  func.func @transform_1(%arg0: i32, %arg1: i32) -> (i32, i32, i32) {
    %c0_i32 = arith.constant 0 : i32
    %c0_i32_0 = arith.constant 0 : i32
    %c0_i32_1 = arith.constant 0 : i32
    return %arg0, %c0_i32, %c0_i32_0 : i32, i32, i32
  }
  func.func @transform_2(%arg0: i32, %arg1: i32) -> (i32, i32, i32) {
    %c0_i32 = arith.constant 0 : i32
    %c0_i32_0 = arith.constant 0 : i32
    %c0_i32_1 = arith.constant 0 : i32
    return %arg1, %c0_i32, %c0_i32_0 : i32, i32, i32
  }
  func.func @transform_3(%arg0: i32, %arg1: i32) -> (i32, i32, i32) {
    %c0_i32 = arith.constant 0 : i32
    %c0_i32_0 = arith.constant 0 : i32
    %c0_i32_1 = arith.constant 0 : i32
    return %arg1, %c0_i32, %c0_i32_0 : i32, i32, i32
  }
  func.func @transform_4(%arg0: i32, %arg1: i32) -> (i32, i32, i32) {
    %c0_i32 = arith.constant 0 : i32
    %c0_i32_0 = arith.constant 0 : i32
    %c0_i32_1 = arith.constant 0 : i32
    return %arg1, %c0_i32, %c0_i32_0 : i32, i32, i32
  }
  func.func @transform_5(%arg0: i32, %arg1: i32) -> (i32, i32, i32) {
    %c0_i32 = arith.constant 0 : i32
    %c0_i32_0 = arith.constant 0 : i32
    %c0_i32_1 = arith.constant 0 : i32
    return %arg1, %c0_i32, %c0_i32_0 : i32, i32, i32
  }
  func.func @transform_6(%arg0: i32, %arg1: i32) -> (i32, i32, i32) {
    %c0_i32 = arith.constant 0 : i32
    %c0_i32_0 = arith.constant 0 : i32
    %c0_i32_1 = arith.constant 0 : i32
    return %arg1, %c0_i32, %c0_i32_0 : i32, i32, i32
  }
  func.func @transform_7(%arg0: i32, %arg1: i32) -> (i32, i32, i32) {
    %c0_i32 = arith.constant 0 : i32
    %c0_i32_0 = arith.constant 0 : i32
    %c0_i32_1 = arith.constant 0 : i32
    return %arg1, %c0_i32, %c0_i32_0 : i32, i32, i32
  }
  func.func @transform_8(%arg0: i32, %arg1: i32) -> (i32, i32, i32) {
    %c0_i32 = arith.constant 0 : i32
    %c0_i32_0 = arith.constant 0 : i32
    %c0_i32_1 = arith.constant 0 : i32
    return %arg1, %c0_i32, %c0_i32_0 : i32, i32, i32
  }
  func.func @transform_9(%arg0: i32, %arg1: i32) -> (i32, i32, i32) {
    %c0_i32 = arith.constant 0 : i32
    %c0_i32_0 = arith.constant 0 : i32
    %c0_i32_1 = arith.constant 0 : i32
    return %arg1, %c0_i32, %c0_i32_0 : i32, i32, i32
  }
  func.func @transform_10(%arg0: i32, %arg1: i32) -> (i32, i32, i32) {
    %c0_i32 = arith.constant 0 : i32
    %c0_i32_0 = arith.constant 0 : i32
    %c0_i32_1 = arith.constant 0 : i32
    return %arg1, %c0_i32, %c0_i32_0 : i32, i32, i32
  }
  func.func @transform_11(%arg0: i32, %arg1: i32) -> (i32, i32, i32) {
    %c0_i32 = arith.constant 0 : i32
    %c0_i32_0 = arith.constant 0 : i32
    %c0_i32_1 = arith.constant 0 : i32
    return %arg1, %c0_i32, %c0_i32_0 : i32, i32, i32
  }
  func.func @transform_12(%arg0: i32, %arg1: i32) -> (i32, i32) {
    %c0_i32 = arith.constant 0 : i32
    %c0_i32_0 = arith.constant 0 : i32
    return %arg0, %c0_i32 : i32, i32
  }
}

</mosaic_0001>

<bundles_post_ra>
// kernel: tpu_custom_call.1
= control target key start
LH: loop header
LB: loop body
LE: loop exit
PB: predicated region body
PF: predicated region fallthrough
CT: control target
= control target key end

     0   :  { %s2376_s0 = inlined_call_operand.hbm [shape: f32[16,32], index: 0, kind: input, shape index: {}]   ;;  %s2377_s1 = inlined_call_operand.hbm [shape: f32[2,1,8], index: 1, kind: input, shape index: {}]   ;;  %s2378_s2 = inlined_call_operand.vmem [shape: bf16[2,32,96], index: 2, kind: input, shape index: {}]   ;;  %s2379_s3 = inlined_call_operand.vmem [shape: bf16[2,32,32], index: 3, kind: input, shape index: {}]   ;;  %s2380_s4 = inlined_call_operand.vmem [shape: f32[2,1,32], index: 4, kind: input, shape index: {}]   ;;  %s2381_s5 = inlined_call_operand.hbm [shape: f32[2,1,32], index: 5, kind: input, shape index: {}]   ;;  %s2382_s6 = inlined_call_operand.vmem [shape: bf16[2,32,64], index: 6, kind: input, shape index: {}]   ;;  %s2383_s7 = inlined_call_operand.vmem [shape: f32[2,1,64], index: 7, kind: input, shape index: {}]   ;;  %s2384_s8 = inlined_call_operand.vmem [shape: bf16[2,64,32], index: 8, kind: input, shape index: {}]   ;;  %s2385_s9 = inlined_call_operand.vmem [shape: f32[2,1,32], index: 9, kind: input, shape index: {}]   ;;  %s2386_s10 = inlined_call_operand.vmem [shape: f32[2,1,32], index: 10, kind: input, shape index: {}]   ;;  %s2387_s11 = inlined_call_operand.hbm [shape: f32[2,1,32], index: 11, kind: input, shape index: {}]   ;;  %s2388_s12 = inlined_call_operand.hbm [shape: f32[16,32], index: 12, kind: output, shape index: {}]  }
   0x1   :  { %2403 = sst [smem:[#allocation28_spill]] %s2376_s0 }
   0x2   :  { %2404 = sst [smem:[#allocation29_spill]] %s2377_s1 }
   0x3   :  { %2405 = sst [smem:[#allocation30_spill]] %s2378_s2 }
   0x4   :  { %2406 = sst [smem:[#allocation31_spill]] %s2379_s3 }
   0x5   :  { %2407 = sst [smem:[#allocation32_spill]] %s2380_s4 }
   0x6   :  { %2408 = sst [smem:[#allocation33_spill]] %s2381_s5 }
   0x7   :  { %2409 = sst [smem:[#allocation34_spill]] %s2382_s6 }
   0x8   :  { %2410 = sst [smem:[#allocation35_spill]] %s2383_s7 }
   0x9   :  { %2411 = sst [smem:[#allocation36_spill]] %s2384_s8 }
   0xa   :  { %2412 = sst [smem:[#allocation37_spill]] %s2385_s9 }
   0xb   :  { %2413 = sst [smem:[#allocation38_spill]] %s2386_s10 }
   0xc   :  { %2414 = sst [smem:[#allocation39_spill]] %s2387_s11 }
   0xd   :  { %2415 = sst [smem:[#allocation40_spill]] %s2388_s12 }
   0xe   :  { %17 = vsyncpa [#allocation3], 0 }
   0xf   :  { %19 = vsyncpa [#allocation3 + $0x1], 0 }
  0x10   :  { %20 = vsyncpa [#allocation6], 0 }
  0x11   :  { %22 = vsyncpa [#allocation6 + $0x1], 0 }
  0x12   :  { %23 = vsyncpa [#allocation9], 0 }
  0x13   :  { %25 = vsyncpa [#allocation9 + $0x1], 0 }
  0x14   :  { %26 = vsyncpa [#allocation4], 0 }
  0x15   :  { %28 = vsyncpa [#allocation4 + $0x1], 0  ;;  %s1989_s21 = smov 0   ;;  %s1991_s22 = smov 0  }
  0x16   :  { %s1993_s23 = smov 0   ;;  %s1995_s24 = smov 0  }
  0x17   :  { %s1997_s25 = smov 0   ;;  %s1999_s26 = smov 0  }
  0x18   :  { %s2001_s27 = smov 0   ;;  %s2003_s28 = smov 0  }
  0x19   :  { %s2005_s29 = smov 0   ;;  %s2007_s30 = smov 0  }
  0x1a   :  { %s2009_s13 = smov 0  }
  0x1b LB: > { %2416 = sst [smem:[#allocation16_spill]] %s1879_s24  ;;  %s2043_s14 = sadd.s32 4294967295, %s1907_s13   ;;  %s1907_s13 = sphi %s2009_s13, %s34_s13   ;;  %s1903_s30 = sphi %s2007_s30, %s2472_s30   ;;  %s1899_s29 = sphi %s2005_s29, %s2471_s29   ;;  %s1895_s28 = sphi %s2003_s28, %s2470_s28   ;;  %s1891_s27 = sphi %s2001_s27, %s2469_s27   ;;  %s1887_s26 = sphi %s1999_s26, %s2468_s26   ;;  %s1883_s25 = sphi %s1997_s25, %s2467_s25   ;;  %s1879_s24 = sphi %s1995_s24, %s2466_s24   ;;  %s1875_s23 = sphi %s1993_s23, %s2475_s23   ;;  %s1871_s22 = sphi %s1991_s22, %s2474_s22   ;;  %s1867_s21 = sphi %s1989_s21, %s2473_s21  }
  0x1c   : > { %2417 = sst [smem:[#allocation17_spill]] %s1883_s25  ;;  %s1405_s15 = sadd.s32 4294967294, %s1907_s13  }
  0x1d   : > { %2418 = sst [smem:[#allocation18_spill]] %s1887_s26  ;;  %p60_p0 = scmp.ne.s32.totalorder %s1887_s26, %s1883_s25 }
  0x1e   : > { %2419 = sst [smem:[#allocation19_spill]] %s1895_s28  ;;  %p61_p1 = scmp.eq.s32.totalorder %s1907_s13, 0 }
  0x1f   : > { %2420 = sst [smem:[#allocation20_spill]] %s1899_s29  ;;  %p66_p2 = scmp.ne.s32.totalorder %s1883_s25, %s1879_s24 }
  0x20   : > { %2421 = sst [smem:[#allocation21_spill]] %s1903_s30  ;;  %p67_p3 = scmp.eq.s32.totalorder %s2043_s14, 0 }
  0x21   : > { %2422 = sst [smem:[#allocation22_spill]] %s1907_s13  ;;  %p2054_p4 = por %p61_p1, %p60_p0 }
  0x22   : > { %p190_p5 = scmp.ne.s32.totalorder %s1875_s23, %s1871_s22  ;;  %p2060_p6 = por %p67_p3, %p66_p2 }
  0x23   : > { %p196_p7 = scmp.ne.s32.totalorder %s1871_s22, %s1867_s21  ;;  %p376_p9 = scmp.eq.s32.totalorder %s2043_s14, 3 }
  0x24   : > { %p2065_p8 = por %p190_p5, %p61_p1  ;;  %p382_p11 = scmp.eq.s32.totalorder %s1405_s15, 3 }
  0x25   : > { %p2070_p10 = por %p196_p7, %p67_p3  ;;  %p2074_p12 = por %p376_p9, %p60_p0 }
  0x26   : > { %p2078_p13 = por %p382_p11, %p66_p2  ;;  %p1519_p1 = scmp.lt.s32.totalorder %s1907_s13, 4 }
  0x27   : > { %s2427_s16 = scalar_select %p2074_p12, 1, 0 }
  0x28   : > { %s2429_s24 = scalar_select %p2078_p13, 1, 0 }
  0x29   : > { %2428 = sst [smem:[#allocation23_spill]] %s2427_s16  ;;  %s402_s21 = sand.u32 1, %s1887_s26  }
  0x2a   : > { %2430 = sst [smem:[#allocation24_spill]] %s2429_s24  ;;  %s421_s12 = sand.u32 1, %s1907_s13  }
  0x2b   : > { %p2087_p3 = pnand %p1519_p1, %p2054_p4  ;;  %s2432_s1 = sld [smem:[#allocation29_spill]] }
  0x2c   : > { %s424_s9 = scalar_lea.vmem [#allocation5], %s402_s21  ;;  %p2097_p0 = pnand %p1519_p1, %p2065_p8 }
  0x2d   : > { %s431_s7 = sshll.u32 %s424_s9, 4  ;;  %s2101_s18 = scalar_lea.sflag [#allocation6], %s421_s12  ;;  %s432_s7 = int_to_ptr.vmem [resolvable:$true] %s431_s7 }
  0x2e   : > { %p1410_p2 = scmp.ge.s32.totalorder %s1907_s13, 1  ;;  %p526_p4 = scmp.lt.s32.totalorder %s1907_s13, 5 }
  0x2f   : > { %s1408_s9 = sshll.u32 %s402_s21, 3  ;;  %s1409_s10 = sshll.u32 %s1903_s30, 3 }
  0x30   : > { %p2108_p5 = pnand %p1410_p2, %p526_p4  ;;  %s2435_s0 = sld [smem:[#allocation28_spill]] }
  0x31   : > { %s427_s8 = scalar_lea.hbm %s2432_s1, %s1903_s30  ;;  %s406_s12 = scalar_lea.vmem [#allocation2], %s1408_s9 }
  0x32   : > { %s429_s16 = sshll.u32 %s427_s8, 4  ;;  %s414_s6 = sshll.u32 %s406_s12, 4  ;;  %s430_s16 = int_to_ptr.hbm [resolvable:$true] %s429_s16  ;;  %s415_s6 = int_to_ptr.vmem [resolvable:$true] %s414_s6 }
  0x33   : > { %1508 = dma.hbm_to_vmem [thread:$0]  (!%p2087_p3), %s430_s16, 16, %s432_s7, %s2101_s18  }
  0x34   : > { %s403_s16 = scalar_lea.sflag [#allocation3], %s402_s21  ;;  %s183_s13 = sadd.s32 1, %s1875_s23 }
  0x35   : > { %s43_s3 = sadd.s32 1, %s1899_s29  ;;  %s462_s2 = sand.u32 1, %s1875_s23  }
  0x36   : > { %s410_s1 = scalar_lea.hbm %s2435_s0, %s1409_s10  ;;  %p44_p7 = scmp.ge.s32.totalorder %s43_s3, 2 }
  0x37   : > { %s412_s7 = sshll.u32 %s410_s1, 4  ;;  %s2436_s5 = sld [smem:[#allocation33_spill]]  ;;  %s413_s7 = int_to_ptr.hbm [resolvable:$true] %s412_s7 }
  0x38   : > { %1505 = dma.hbm_to_vmem [thread:$0]  (!%p2087_p3), %s413_s7, 128, %s415_s6, %s403_s16  }
  0x39   : > { %s463_s1 = scalar_lea.vmem [#allocation7], %s462_s2  ;;  %s2477_s3 = smov (%p44_p7, %s43_s3), 0 }
  0x3a   : > { %s470_s10 = sshll.u32 %s463_s1, 4  ;;  %2437 = sst [smem:[#allocation25_spill]] %s2477_s3  ;;  %s471_s10 = int_to_ptr.vmem [resolvable:$true] %s470_s10 }
  0x3b   : > { %s2438_s6 = sadd.s32 1, %s1903_s30  ;;  %s180_s28 = ssub.s32 %s1899_s29, %s2477_s3 }
  0x3c   : > { %s2479_s6 = smov (!%p44_p7, %s2438_s6), %s1903_s30  ;;  %p181_p9 = scmp.eq.s32.totalorder %s180_s28, 0 }
  0x3d   : > { %s466_s9 = scalar_lea.hbm %s2436_s5, %s1899_s29  ;;  %p48_p8 = scmp.ge.s32.totalorder %s2479_s6, 2 }
  0x3e   : > { %s468_s21 = sshll.u32 %s466_s9, 4  ;;  %s2440_s12 = sadd.s32 1, %s1887_s26  ;;  %s469_s21 = int_to_ptr.hbm [resolvable:$true] %s468_s21 }
  0x3f   : > { %s2481_s6 = smov (%p48_p8, %s2479_s6), 0  ;;  %s2442_s11 = sld [smem:[#allocation39_spill]] }
  0x40   : > { %2439 = sst [smem:[#allocation26_spill]] %s2481_s6  ;;  %s50_s15 = ssub.s32 %s1903_s30, %s2481_s6 }
  0x41   : > { %s2135_s4 = scalar_select %p181_p9, %s1875_s23, %s183_s13  }
  0x42   : > { %p51_p11 = scmp.eq.s32.totalorder %s50_s15, 0  ;;  %s514_s1 = scalar_lea.vmem [#allocation8], %s462_s2 }
  0x43   : > { %1511 = dma.hbm_to_vmem [thread:$0]  (!%p2097_p0), %s469_s21, 16, %s471_s10, %s2101_s18  }
  0x44   : > { %s2145_s7 = scalar_select %p51_p11, %s1887_s26, %s2440_s12  }
  0x45   : > { %s517_s9 = scalar_lea.hbm %s2442_s11, %s1899_s29  ;;  %s521_s28 = sshll.u32 %s514_s1, 4  ;;  %s522_s28 = int_to_ptr.vmem [resolvable:$true] %s521_s28 }
  0x46   : > { %2441 = sst [smem:[#allocation27_spill]] %s2145_s7  ;;  %s519_s0 = sshll.u32 %s517_s9, 4  ;;  %s520_s0 = int_to_ptr.hbm [resolvable:$true] %s519_s0 }
  0x47   : > { %s512_s5 = scalar_lea.sflag [#allocation9], %s462_s2  ;;  %530 = sbr.rel (%p2108_p5) target bundleno = 1980 (0x7bc), region = 68 }
  0x48   : > { %1514 = dma.hbm_to_vmem [thread:$0]  (!%p2097_p0), %s520_s0, 16, %s522_s28, %s512_s5  }
  0x49   : > { %s2156_s13 = sand.u32 (!%p2108_p5), 1, %s1883_s25  }
  0x4a   : > { %s2396_s18 = sshll.u32 (!%p2108_p5), %s2156_s13, 3  ;;  %s533_s10 = scalar_lea.sflag (!%p2108_p5), [#allocation3], %s2156_s13 }
  0x4b   : > { %s2162_s21 = scalar_lea.vmem (!%p2108_p5), [#allocation2], %s2396_s18 }
  0x4c   : > { %1846 = dma.done.wait (%p2060_p6), %s533_s10, 128  }
  0x4d   : > { %1848 = vsyncadd (%p2060_p6), %s533_s10, 4294967168  ;;  %s542_s0 = sand.u32 1, %s2043_s14  }
  0x4e   : > { %s543_s2 = scalar_lea.sflag [#allocation6], %s542_s0 }
  0x4f   : > { %1850 = dma.done.wait (%p2060_p6), %s543_s2, 16  }
  0x50   : > { %1852 = vsyncadd (%p2060_p6), %s543_s2, 4294967280  ;;  %s2175_s24 = sand.u32 1, %s1871_s22  }
  0x51   : > { %1854 = dma.done.wait (%p2070_p10), %s543_s2, 16  }
  0x52   : > { %1856 = vsyncadd (%p2070_p10), %s543_s2, 4294967280  ;;  %s561_s14 = scalar_lea.sflag [#allocation9], %s2175_s24 }
  0x53   : > { %1858 = dma.done.wait (%p2070_p10), %s561_s14, 16  }
  0x54   : > { %1860 = vsyncadd (%p2070_p10), %s561_s14, 4294967280  ;;  %p649_p6 = scmp.lt.s32.totalorder %s1891_s27, 1  ;;  %s2444_s10 = sld [smem:[#allocation30_spill]] }
  0x55   : > { %s2445_s15 = sld [smem:[#allocation31_spill]]  ;;  %p1421_p10 = scmp.ne.s32.totalorder %s1891_s27, 0 }
  0x56   : > { %s2190_s19 = scalar_select %p649_p6, %s1891_s27, 1 }
  0x57   : > { %s2446_s11 = sld [smem:[#allocation34_spill]] }
  0x58   : > { %s1478_s12 = sshll.u32 %s2190_s19, 4  ;;  %s2447_s29 = sld [smem:[#allocation35_spill]] }
  0x59   : > { %s1481_s16 = sshll.u32 %s2190_s19, 5  ;;  %s2448_s1 = sld [smem:[#allocation37_spill]] }
  0x5a   : > { %s653_s0 = scalar_lea.vmem %s2444_s10, %s1478_s12  ;;  %s2449_s26 = sld [smem:[#allocation36_spill]] }
  0x5b   : > { %s2203_s8 = scalar_lea.vmem %s2445_s15, %s1478_s12  ;;  %s2450_s25 = sld [smem:[#allocation38_spill]] }
  0x5d   : > { %s2208_s6 = scalar_lea.vmem %s2446_s11, %s1478_s12  ;;  %s2451_s11 = sshll.u32 %s2156_s13, 3 }
  0x5e   : > { %s669_s7 = scalar_lea.vmem %s2447_s29, %s2190_s19  ;;  %s2230_s5 = scalar_lea.vmem [#allocation10], %s2451_s11 }
  0x5f   : > { %s677_s28 = scalar_lea.vmem %s2448_s1, %s2190_s19  ;;  %685 = sbr.rel (%p1421_p10) target bundleno = 102 (0x66), region = 88 }
  0x60   : > { %s2222_s2 = scalar_lea.vmem %s2449_s26, %s1481_s16 }
  0x61   : > { %s680_s18 = scalar_lea.vmem %s2450_s25, %s2190_s19 }
  0x64   : > { %v686_v0 = vld [vmem:[%s2162_s21] sm:$0xff]  ;;  %vm687_vm0 = vcmask 261120  }
  0x65   : > { %688 = vst.msk [vmem:[%s2230_s5] sm:$0xff] %vm687_vm0, %v686_v0 }
  0x66 PF: > { %v1483_v1 = vld [vmem:[%s653_s0 + $0x8] sm:$0xff]  ;;  %v1482_v2 = vld [vmem:[%s653_s0] sm:$0xff]  ;;  %vm729_vm1 = vcmask 261120   ;;  %s1909_s3 = smov 104   ;;  %s1910_s25 = smov 120   ;;  %vm754_vm2 = vcmask 64512  }
  0x67   : > { %739 = vmatpush.bf16.msra.mxu0 %v1483_v1  ;;  %s1911_s26 = smov 96   ;;  %s1912_s27 = smov 80   ;;  %vm791_vm3 = vcmask 1043456   ;;  %vm989_vm4 = vcmask 130048   ;;  %vm991_vm5 = vcmask 195584   ;;  %vm1120_vm10 = vcmask 523264  }
  0x68   : > { %s1913_s29 = smov 72   ;;  %s1914_s30 = smov 88  }
  0x69   : > { %s1915_s21 = smov 112   ;;  %s2452_s12 = scalar_lea.vmem [#allocation5], %s2156_s13 }
  0x6a   : > { %v1624_v19 = vld [vmem:[%s2452_s12] ss:$0 sm:$0xff]  ;;  %s1916_s1 = smov 64   ;;  %s1917_s0 = smov 40  }
  0x6b   : > { %740 = vmatpush.bf16.msra.mxu0 %v1482_v2  ;;  %s1918_s16 = smov 56   ;;  %s1919_s20 = smov 48  }
  0x6c   : > { %v2236_v3 = vld [vmem:[%s2230_s5] sm:$0xff]  ;;  %s1920_s9 = smov 8   ;;  %s1921_s17 = smov 16  }
  0x6d   : > { %v716_v4 = vpack.c.bf16 %v2236_v3, %v2236_v3  ;;  %s1922_s10 = smov 24   ;;  %s2453_s15 = sld [smem:[#allocation32_spill]] }
  0x6e   : > { %s2455_s11 = scalar_lea.vmem [#allocation7], %s2175_s24 }
  0x6f   : > { %1430 = vmatmul.msk.bf16.vlgmr.msra.gmra.mxu0 %vm729_vm1, %v716_v4 }
  0x73   : > { %s2454_s14 = scalar_lea.vmem %s2453_s15, %s2190_s19 }
  0xec   : > { %v742_v5 = vpop.f32.mrf.mxu0 }
  0xed   : > { %v2241_v6 = vpack.c.bf16 %v742_v5, %v742_v5 }
  0xef   : > { %920 = vrot.lane.b32.xlu2 %v2241_v6, %s1909_s3  ;;  %808 = vrot.lane.b32.xlu1 %v2241_v6, %s1910_s25 }
  0xf0   : > { %752 = vrot.lane.b32.xlu0 %v2241_v6, %s1911_s26 }
  0xf4   : > { %v744_v7 = vpop.f32.mrf.mxu0 }
  0xf7   : > { %866 = vrot.lane.b32.xlu2 %v2241_v6, %s1912_s27  ;;  %922 = vrot.lane.b32.xlu1 %v2241_v6, %s1913_s29 }
  0xf8   : > { %810 = vrot.lane.b32.xlu0 %v2241_v6, %s1914_s30 }
 0x100   : > { %864 = vrot.lane.b32.xlu0 %v2241_v6, %s1915_s21 }
 0x149   : > { %v921_v8 = vpop.permute.xlu2 %920 }
 0x151   : > { %v867_v9 = vpop.permute.xlu2 %866 }
 0x152   : > { %v872_v10 = vsel %vm754_vm2, %v867_v9, 0 }
 0x153   : > { %881 = vmatpush.bf16.xpose.msrb.mxu0 %v872_v10 }
 0x161   : > { %v809_v11 = vpop.permute.xlu1 %808 }
 0x162   : > { %v753_v12 = vpop.permute.xlu0 %752 }
 0x163   : > { %v759_v13 = vsel %vm754_vm2, %v753_v12, 0 }
 0x164   : > { %768 = vmatpush.bf16.xpose.msra.mxu1 %v759_v13 }
 0x169   : > { %v923_v14 = vpop.permute.xlu1 %922 }
 0x16a   : > { %v811_v15 = vpop.permute.xlu0 %810  ;;  %v928_v16 = vsel %vm754_vm2, %v923_v14, 0 }
 0x16b   : > { %1431 = vmatmul.msk.bf16.vlgmr.msra.gmra.mxu1 %vm754_vm2, %v2241_v6  ;;  %v816_v17 = vsel %vm754_vm2, %v811_v15, 0 }
 0x16c   : > { %825 = vmatpush.bf16.xpose.msra.mxu3 %v816_v17 }
 0x172   : > { %v865_v18 = vpop.permute.xlu0 %864 }
 0x173   : > { %1433 = vmatmul.msk.bf16.vlgmr.msra.gmra.mxu3 %vm754_vm2, %v809_v11  ;;  %1435 = vmatmul.msk.bf16.vlgmr.msrb.gmra.mxu0 %vm754_vm2, %v865_v18 }
 0x174   : > { %937 = vmatpush.bf16.xpose.msrb.mxu3 %v928_v16 }
 0x183   : > { %1437 = vmatmul.msk.bf16.vlgmr.msrb.gmra.mxu3 %vm754_vm2, %v921_v8 }
 0x1e8   : > { %v770_v20 = vpop.f32.mrf.mxu1 }
 0x1e9   : > { %v771_v21 = vadd.f32 %v1624_v19, %v770_v20 }
 0x1eb   : > { %v774_v22 = vsel %vm754_vm2, %v771_v21, -inf }
 0x1ec   : > { %775 = vmax.xlane.f32.xlu1 %v774_v22 }
 0x1f0   : > { %v772_v23 = vpop.f32.mrf.mxu1  ;;  %v883_v24 = vpop.f32.mrf.mxu0 }
 0x1f1   : > { %v884_v29 = vadd.f32 %v1624_v19, %v883_v24 }
 0x1f3   : > { %v887_v31 = vsel %vm754_vm2, %v884_v29, -inf }
 0x1f6   : > { %v827_v25 = vpop.f32.mrf.mxu3 }
 0x1f7   : > { %v828_v26 = vadd.f32 %v1624_v19, %v827_v25  ;;  %v1485_v25 = vld [vmem:[%s2203_s8 + $0x8] sm:$0xff] }
 0x1f8   : > { %v885_v27 = vpop.f32.mrf.mxu0  ;;  %1015 = vmatpush.bf16.msra.mxu0 %v1485_v25 }
 0x1f9   : > { %v831_v28 = vsel %vm754_vm2, %v828_v26, -inf }
 0x1fa   : > { %832 = vmax.xlane.f32.xlu2 %v831_v28 }
 0x1fe   : > { %v829_v30 = vpop.f32.mrf.mxu3 }
 0x202   : > { %888 = vmax.xlane.f32.xlu2 %v887_v31 }
 0x206   : > { %v939_v32 = vpop.f32.mrf.mxu3 }
 0x207   : > { %v940_v33 = vadd.f32 %v1624_v19, %v939_v32 }
 0x209   : > { %v943_v34 = vsel %vm754_vm2, %v940_v33, -inf }
 0x20a   : > { %944 = vmax.xlane.f32.xlu0 %v943_v34 }
 0x20e   : > { %v941_v35 = vpop.f32.mrf.mxu3 }
 0x21a   : > { %786 = vrot.lane.b32.xlu2 %v2241_v6, %s1916_s1 }
 0x222   : > { %955 = vrot.lane.b32.xlu2 %v2241_v6, %s1917_s0 }
 0x25f   : > { %v776_v36 = vpop.xlane.xlu1 %775 }
 0x260   : > { %v777_v37 = vsub.f32 %v771_v21, %v776_v36 }
 0x262   : > { %v778_v38 = vmul.f32 1.442695, %v777_v37 }
 0x264   : > { %1631 = vpow2.f32 %v778_v38  ;;  %v1923_v38 = vmov 32.0  }
 0x26a   : > { %v1632_v39 = vpop.eup %1631 }
 0x26b   : > { %v780_v40 = vsel %vm754_vm2, %v1632_v39, 0.0 }
 0x26c   : > { %781 = vadd.xlane.f32.xlu1 %v780_v40 }
 0x26d   : > { %v833_v41 = vpop.xlane.xlu2 %832 }
 0x26e   : > { %v834_v44 = vsub.f32 %v828_v26, %v833_v41  ;;  %v1484_v26 = vld [vmem:[%s2203_s8] sm:$0xff]  ;;  %s1170_s8 = scalar_lea.sflag [#allocation4], %s2156_s13 }
 0x26f   : > { %1016 = vmatpush.bf16.msra.mxu0 %v1484_v26 }
 0x270   : > { %v835_v46 = vmul.f32 1.442695, %v834_v44 }
 0x275   : > { %v889_v42 = vpop.xlane.xlu2 %888 }
 0x276   : > { %v890_v43 = vsub.f32 %v884_v29, %v889_v42 }
 0x278   : > { %v891_v45 = vmul.f32 1.442695, %v890_v43 }
 0x27a   : > { %1633 = vpow2.f32 %v891_v45 }
 0x27b   : > { %1635 = vpow2.f32 %v835_v46 }
 0x27d   : > { %v945_v47 = vpop.xlane.xlu0 %944  ;;  %v787_v48 = vpop.permute.xlu2 %786 }
 0x27e   : > { %v793_v49 = vsel %vm791_vm3, %v787_v48, 0  ;;  %v946_v51 = vsub.f32 %v940_v33, %v945_v47 }
 0x27f   : > { %802 = vmatpush.bf16.msra.mxu2 %v793_v49  ;;  %v1487_v49 = vld [vmem:[%s2208_s6 + $0x8] sm:$0xff] }
 0x280   : > { %v1634_v50 = vpop.eup %1633  ;;  %v947_v53 = vmul.f32 1.442695, %v946_v51  ;;  %v1491_v51 = vld [vmem:[%s2222_s2 + $0x18] sm:$0xff] }
 0x281   : > { %v893_v52 = vsel %vm754_vm2, %v1634_v50, 0.0  ;;  %v1636_v54 = vpop.eup %1635  ;;  %1128 = vmatpush.bf16.msra.mxu3 %v1491_v51 }
 0x282   : > { %894 = vadd.xlane.f32.xlu0 %v893_v52  ;;  %1637 = vpow2.f32 %v947_v53  ;;  %v837_v55 = vsel %vm754_vm2, %v1636_v54, 0.0 }
 0x285   : > { %843 = vrot.lane.b32.xlu1 %v2241_v6, %s1918_s16  ;;  %v956_v63 = vpop.permute.xlu2 %955  ;;  %s2460_s16 = sld [smem:[#allocation40_spill]] }
 0x286   : > { %v961_v2 = vsel %vm791_vm3, %v956_v63, 0  ;;  %v1625_v63 = vld [vmem:[%s2454_s14] ss:$0 sm:$0xff] }
 0x288   : > { %v1638_v56 = vpop.eup %1637 }
 0x289   : > { %v949_v57 = vsel %vm754_vm2, %v1638_v56, 0.0 }
 0x28a   : > { %838 = vadd.xlane.f32.xlu0 %v837_v55 }
 0x292   : > { %950 = vadd.xlane.f32.xlu0 %v949_v57 }
 0x2a6   : > { %899 = vrot.lane.b32.xlu0 %v2241_v6, %s1919_s20 }
 0x2df   : > { %v782_v58 = vpop.xlane.xlu1 %781 }
 0x2e0   : > { %1639 = vrcp.f32 %v782_v58 }
 0x2e6   : > { %v1640_v59 = vpop.eup %1639 }
 0x2e7   : > { %v784_v60 = vmul.f32 %v1640_v59, %v1632_v39 }
 0x2e9   : > { %v785_v61 = vpack.c.bf16 %v784_v60, %v784_v60 }
 0x2eb   : > { %1432 = vmatmul.msk.bf16.vlgmr.msra.gmra.mxu2 %vm754_vm2, %v785_v61 }
 0x2f5   : > { %v895_v62 = vpop.xlane.xlu0 %894 }
 0x2f7   : > { %v844_v0 = vpop.permute.xlu1 %843 }
 0x2f8   : > { %v849_v1 = vsel %vm791_vm3, %v844_v0, 0 }
 0x2f9   : > { %858 = vmatpush.bf16.msrb.mxu2 %v849_v1  ;;  %v1626_v1 = vld [vmem:[%s2455_s11] ss:$0 sm:$0xff] }
 0x2fd   : > { %970 = vmatpush.bf16.msra.mxu2 %v961_v2  ;;  %v839_v4 = vpop.xlane.xlu0 %838 }
 0x2fe   : > { %1641 = vrcp.f32 %v839_v4 }
 0x304   : > { %v1642_v5 = vpop.eup %1641 }
 0x305   : > { %v841_v6 = vmul.f32 %v1642_v5, %v1636_v54  ;;  %v951_v7 = vpop.xlane.xlu0 %950  ;;  %v1490_v54 = vld [vmem:[%s2222_s2 + $0x10] sm:$0xff] }
 0x306   : > { %1643 = vrcp.f32 %v951_v7  ;;  %1129 = vmatpush.bf16.msra.mxu3 %v1490_v54  ;;  %v1488_v7 = vld [vmem:[%s2222_s2] sm:$0xff] }
 0x307   : > { %v842_v8 = vpack.c.bf16 %v841_v6, %v841_v6  ;;  %1645 = vrcp.f32 %v895_v62 }
 0x308   : > { %1647 = vrcp.f32 %v1923_v38 }
 0x309   : > { %1434 = vmatmul.msk.bf16.vlgmr.msrb.gmra.mxu2 %vm754_vm2, %v842_v8  ;;  %v1627_v8 = vld [vmem:[%s669_s7] ss:$0 sm:$0xff]  ;;  %s2458_s7 = sld [smem:[#allocation19_spill]] }
 0x30c   : > { %v1644_v9 = vpop.eup %1643 }
 0x30d   : > { %v953_v10 = vmul.f32 %v1644_v9, %v1638_v56  ;;  %v1646_v11 = vpop.eup %1645  ;;  %v1489_v56 = vld [vmem:[%s2222_s2 + $0x8] sm:$0xff] }
 0x30e   : > { %v897_v12 = vmul.f32 %v1646_v11, %v1634_v50  ;;  %v1648_v39 = vpop.eup %1647  ;;  %v1486_v50 = vld [vmem:[%s2208_s6] sm:$0xff]  ;;  %1130 = vmatpush.bf16.msra.mxu3 %v1489_v56 }
 0x30f   : > { %v954_v13 = vpack.c.bf16 %v953_v10, %v953_v10  ;;  %v1026_v40 = vmul.f32 32.0, %v1648_v39  ;;  %vm1030_vm6 = vweird.f32 %v1648_v39 }
 0x310   : > { %v898_v16 = vpack.c.bf16 %v897_v12, %v897_v12 }
 0x311   : > { %v1027_v41 = vsub.f32 1.0, %v1026_v40 }
 0x312   : > { %1131 = vmatpush.bf16.msra.mxu3 %v1488_v7 }
 0x313   : > { %v1028_v42 = vmul.f32 %v1648_v39, %v1027_v41 }
 0x315   : > { %v1029_v43 = vadd.f32 %v1648_v39, %v1028_v42 }
 0x317   : > { %v1031_v44 = vsel %vm1030_vm6, %v1648_v39, %v1029_v43 }
 0x318   : > { %v900_v14 = vpop.permute.xlu0 %899 }
 0x319   : > { %1438 = vmatmul.msk.bf16.vlgmr.msra.gmra.mxu2 %vm754_vm2, %v954_v13  ;;  %v905_v15 = vsel %vm791_vm3, %v900_v14, 0  ;;  %v1628_v14 = vld [vmem:[%s677_s28] ss:$0 sm:$0xff]  ;;  %s1475_s28 = sshll.u32 %s2458_s7, 3 }
 0x31a   : > { %914 = vmatpush.bf16.msrb.mxu1 %v905_v15  ;;  %s1180_s20 = scalar_lea.hbm %s2460_s16, %s1475_s28 }
 0x31b   : > { %s1184_s6 = sshll.u32 %s1180_s20, 4  ;;  %s1185_s6 = int_to_ptr.hbm [resolvable:$true] %s1184_s6 }
 0x31c   : > { %s1787_s19 = sshra.s32 %s1185_s6, 4  ;;  %s1788_s19 = int_to_ptr.hbm [resolvable:$true] %s1787_s19 }
 0x31d   : > { %1436 = vmatmul.msk.bf16.vlgmr.msrb.gmra.mxu1 %vm754_vm2, %v898_v16  ;;  %p1794_p2 = scmp.lt.s32.totalorder %s1788_s19, %s2460_s16 }
 0x31e   : > { %1084 = vmatpush.bf16.msra.mxu1 %v1487_v49 }
 0x322   : > { %1085 = vmatpush.bf16.msra.mxu1 %v1486_v50 }
 0x36e   : > { %v804_v17 = vpop.f32.mrf.mxu2 }
 0x376   : > { %v806_v18 = vpop.f32.mrf.mxu2 }
 0x38c   : > { %v860_v19 = vpop.f32.mrf.mxu2 }
 0x38d   : > { %977 = vrot.lane.b32.xlu1 %v860_v19, %s1920_s9 }
 0x394   : > { %v862_v20 = vpop.f32.mrf.mxu2 }
 0x39a   : > { %v916_v21 = vpop.f32.mrf.mxu1 }
 0x39b   : > { %981 = vrot.lane.b32.xlu2 %v916_v21, %s1921_s17  ;;  %s2462_s17 = scalar_lea.vmem [#allocation8], %s2175_s24  ;;  %s1793_s24 = scalar_lea.hbm %s2460_s16, 16 }
 0x39c   : > { %v972_v22 = vpop.f32.mrf.mxu2 }
 0x39d   : > { %985 = vrot.lane.b32.xlu1 %v972_v22, %s1922_s10  ;;  %s1182_s10 = sshll.u32 %s2230_s5, 4  ;;  %s1183_s10 = int_to_ptr.vmem [resolvable:$true] %s1182_s10 }
 0x3a2   : > { %v918_v23 = vpop.f32.mrf.mxu1 }
 0x3a4   : > { %v974_v24 = vpop.f32.mrf.mxu2 }
 0x3f5   : > { %v982_v29 = vpop.permute.xlu2 %981 }
 0x3ff   : > { %v978_v27 = vpop.permute.xlu1 %977 }
 0x400   : > { %v988_v28 = vsel %vm754_vm2, %v804_v17, %v978_v27 }
 0x401   : > { %v990_v31 = vsel %vm989_vm4, %v988_v28, %v982_v29 }
 0x40f   : > { %v986_v30 = vpop.permute.xlu1 %985 }
 0x410   : > { %v992_v32 = vsel %vm991_vm5, %v990_v31, %v986_v30 }
 0x411   : > { %v993_v33 = vpack.c.bf16 %v992_v32, %v992_v32 }
 0x413   : > { %1447 = vmatmul.msk.bf16.vlgmr.msra.gmra.mxu0 %vm729_vm1, %v993_v33 }
 0x490   : > { %v1018_v34 = vpop.f32.mrf.mxu0 }
 0x491   : > { %v1019_v35 = vadd.f32 %v1018_v34, %v2236_v3  ;;  %v1629_v34 = vld [vmem:[%s680_s18] ss:$0 sm:$0xff]  ;;  %s1789_s18 = scalar_lea.hbm %s1788_s19, 8 }
 0x492   : > { %p1790_p1 = scmp.ne.s32.totalorder %s1788_s19, %s1789_s18  ;;  %p1795_p4 = scmp.lt.s32.totalorder %s1793_s24, %s1789_s18 }
 0x493   : > { %v1022_v36 = vsel %vm729_vm1, %v1019_v35, 0.0 }
 0x494   : > { %1023 = vadd.xlane.f32.xlu2 %v1022_v36  ;;  %p1791_p3 = pnand %p1790_p1, %p2074_p12  ;;  %p1796_p5 = por %p1795_p4, %p1794_p2 }
 0x496   : > { %p1792_p0 = pneg %p1791_p3 }
 0x498   : > { %v1020_v37 = vpop.f32.mrf.mxu0  ;;  %p1797_p7 = pnand %p1796_p5, %p1792_p0 }
 0x499   : > { %v1630_v37 = vld [vmem:[%s2462_s17] ss:$0 sm:$0xff] }
 0x507   : > { %v1024_v45 = vpop.xlane.xlu2 %1023 }
 0x508   : > { %v1032_v46 = vmul.f32 %v1031_v44, %v1024_v45 }
 0x50a   : > { %v1033_v3 = vsub.f32 %v1019_v35, %v1032_v46 }
 0x50c   : > { %v1034_v47 = vmul.f32 %v1033_v3, %v1033_v3 }
 0x50e   : > { %v1035_v48 = vsel %vm729_vm1, %v1034_v47, 0.0 }
 0x50f   : > { %1036 = vadd.xlane.f32.xlu1 %v1035_v48 }
 0x582   : > { %v1037_v52 = vpop.xlane.xlu1 %1036 }
 0x583   : > { %v1038_v53 = vmul.f32 %v1037_v52, %v1031_v44 }
 0x585   : > { %v1039_v55 = vadd.f32 1e-06, %v1038_v53 }
 0x587   : > { %1649 = vrsqrt.f32 %v1039_v55  ;;  %vm1046_vm8 = vweird.f32 %v1039_v55 }
 0x58d   : > { %v1650_v57 = vpop.eup %1649 }
 0x58e   : > { %v1041_v58 = vmul.f32 %v1650_v57, %v1039_v55  ;;  %vm1047_vm7 = vweird.f32 %v1650_v57 }
 0x58f   : > { %vm1048_vm9 = vmor %vm1046_vm8, %vm1047_vm7 }
 0x590   : > { %v1042_v59 = vmul.f32 %v1650_v57, %v1041_v58 }
 0x592   : > { %v1043_v60 = vmul.f32 0.5, %v1042_v59 }
 0x594   : > { %v1044_v61 = vsub.f32 1.5, %v1043_v60 }
 0x596   : > { %v1045_v62 = vmul.f32 %v1650_v57, %v1044_v61 }
 0x598   : > { %v1049_v0 = vsel %vm1048_vm9, %v1650_v57, %v1045_v62 }
 0x599   : > { %v1050_v2 = vmul.f32 %v1049_v0, %v1033_v3 }
 0x59b   : > { %v1054_v4 = vmul.f32 %v1625_v63, %v1050_v2 }
 0x59d   : > { %v1058_v5 = vadd.f32 %v1626_v1, %v1054_v4 }
 0x59f   : > { %v1059_v6 = vpack.c.bf16 %v1058_v5, %v1058_v5 }
 0x5a1   : > { %1456 = vmatmul.msk.bf16.vlgmr.msra.gmra.mxu1 %vm729_vm1, %v1059_v6 }
 0x61e   : > { %v1087_v9 = vpop.f32.mrf.mxu1 }
 0x61f   : > { %v1088_v10 = vadd.f32 %v1627_v8, %v1087_v9 }
 0x621   : > { %v1091_v11 = vmax.f32 %v1088_v10, 0.0 }
 0x623   : > { %v1092_v12 = vpack.c.bf16 %v1091_v11, %v1091_v11 }
 0x625   : > { %1473 = vmatmul.msk.bf16.vlgmr.msra.gmra.mxu3 %vm1120_vm10, %v1092_v12 }
 0x626   : > { %v1089_v13 = vpop.f32.mrf.mxu1 }
 0x6a8   : > { %v1133_v15 = vpop.f32.mrf.mxu3 }
 0x6a9   : > { %v1134_v16 = vadd.f32 %v1628_v14, %v1133_v15 }
 0x6ab   : > { %v1137_v17 = vadd.f32 %v1134_v16, %v1058_v5 }
 0x6ad   : > { %v1138_v18 = vsel %vm729_vm1, %v1137_v17, 0.0 }
 0x6ae   : > { %1139 = vadd.xlane.f32.xlu0 %v1138_v18 }
 0x6b0   : > { %v1135_v19 = vpop.f32.mrf.mxu3 }
 0x721   : > { %v1140_v20 = vpop.xlane.xlu0 %1139 }
 0x722   : > { %v1141_v21 = vmul.f32 %v1140_v20, %v1031_v44 }
 0x724   : > { %v1142_v22 = vsub.f32 %v1137_v17, %v1141_v21 }
 0x726   : > { %v1143_v23 = vmul.f32 %v1142_v22, %v1142_v22 }
 0x728   : > { %v1144_v24 = vsel %vm729_vm1, %v1143_v23, 0.0 }
 0x729   : > { %1145 = vadd.xlane.f32.xlu2 %v1144_v24 }
 0x79c   : > { %v1146_v25 = vpop.xlane.xlu2 %1145 }
 0x79d   : > { %v1147_v26 = vmul.f32 %v1146_v25, %v1031_v44 }
 0x79f   : > { %v1148_v27 = vadd.f32 1e-06, %v1147_v26 }
 0x7a1   : > { %1651 = vrsqrt.f32 %v1148_v27  ;;  %vm1155_vm12 = vweird.f32 %v1148_v27 }
 0x7a7   : > { %v1652_v28 = vpop.eup %1651 }
 0x7a8   : > { %v1150_v29 = vmul.f32 %v1652_v28, %v1148_v27  ;;  %vm1156_vm11 = vweird.f32 %v1652_v28 }
 0x7a9   : > { %vm1157_vm13 = vmor %vm1155_vm12, %vm1156_vm11 }
 0x7aa   : > { %v1151_v30 = vmul.f32 %v1652_v28, %v1150_v29 }
 0x7ac   : > { %v1152_v31 = vmul.f32 0.5, %v1151_v30 }
 0x7ae   : > { %v1153_v32 = vsub.f32 1.5, %v1152_v31 }
 0x7b0   : > { %v1154_v33 = vmul.f32 %v1652_v28, %v1153_v32 }
 0x7b2   : > { %v1158_v35 = vsel %vm1157_vm13, %v1652_v28, %v1154_v33 }
 0x7b3   : > { %v1159_v36 = vmul.f32 %v1158_v35, %v1142_v22 }
 0x7b5   : > { %v1163_v38 = vmul.f32 %v1629_v34, %v1159_v36 }
 0x7b7   : > { %v1167_v39 = vadd.f32 %v1630_v37, %v1163_v38 }
 0x7b9   : > { %1168 = vst.msk [vmem:[%s2230_s5] sm:$0xff] %vm729_vm1, %v1167_v39 }
 0x7ba   : > { %1800 = shalt.err (!%p1797_p7)
}
 0x7bb   : > { %1500 = dma.vmem_to_hbm [thread:$0]  (%p2074_p12), %s1183_s10, 128, %s1185_s6, %s1170_s8  }
 0x7bc PF: > { %s2463_s13 = sld [smem:[#allocation22_spill]] }
 0x7bd   : > { %s2464_s5 = sld [smem:[#allocation16_spill]] }
 0x7c2   : > { %p1520_p8 = scmp.ge.s32.totalorder %s2463_s13, 2 }
 0x7c3   : > { %s1196_s26 = sand.u32 1, %s2464_s5  }
 0x7c4   : > { %p1516_p9 = pnand %p1520_p8, %p2078_p13  ;;  %s1197_s27 = scalar_lea.sflag [#allocation4], %s1196_s26 }
 0x7c6   : > { %p1517_p11 = pneg %p1516_p9 }
 0x7c8   : > { %1862 = dma.done.wait (%p1517_p11), %s1197_s27, 128  }
 0x7c9   : > { %1864 = vsyncadd (%p1517_p11), %s1197_s27, 4294967168  ;;  %s34_s13 = sadd.s32 1, %s2463_s13   ;;  %s2466_s24 = sld [smem:[#allocation17_spill]] }
 0x7ca   : > { %p31_p6 = scmp.ge.s32.totalorder %s34_s13, 6   ;;  %s2467_s25 = sld [smem:[#allocation18_spill]] }
 0x7cb   : > { %s2468_s26 = sld [smem:[#allocation27_spill]]  ;;  %s2473_s21 = smov %s1871_s22 }
 0x7cc   : > { %s2469_s27 = sld [smem:[#allocation20_spill]]  ;;  %s2474_s22 = smov %s1875_s23 }
 0x7cd   : > { %s2470_s28 = sld [smem:[#allocation21_spill]]  ;;  %s2475_s23 = smov %s2135_s4 }
 0x7ce   : > { %s2471_s29 = sld [smem:[#allocation25_spill]]  ;;  %33 = sbr.rel (!%p31_p6) target bundleno = 27 (0x1b), region = 178 }
 0x7cf   : > { %s2472_s30 = sld [smem:[#allocation26_spill]] }
 0x7d3   :  { %1203 = vsyncpa [#allocation3], 1 }
 0x7d4   :  { %1205 = vsyncpa [#allocation3 + $0x1], 1 }
 0x7d5   :  { %1206 = vsyncpa [#allocation6], 1 }
 0x7d6   :  { %1208 = vsyncpa [#allocation6 + $0x1], 1 }
 0x7d7   :  { %1209 = vsyncpa [#allocation9], 1 }
 0x7d8   :  { %1211 = vsyncpa [#allocation9 + $0x1], 1 }
 0x7d9   :  { %1212 = vsyncpa [#allocation4], 1 }
 0x7da   :  { %1214 = vsyncpa [#allocation4 + $0x1], 1 }

</bundles_post_ra>
